<compile_context>
chip_gen: v6e
topology: v6e:2x2x1
jax: 0.10.0
libtpu: 0.0.40
codegen_flags: <defaults>
</compile_context>

<pallas_src>
import functools

import jax
import jax.numpy as jnp
from jax.experimental import pallas as pl
from jax.experimental.pallas import tpu as pltpu

SAME_MARGIN = 0.5
DIFFERENT_MARGIN = 1.5
EPS = 1e-8  # matches torch.nn.functional.cosine_similarity default eps


def _round_up(x, m):
    return (x + m - 1) // m * m


def _vmem_capacity_bytes():
    """Physical per-core VMEM; conservative (v7x-sized) fallback if unknown."""
    try:
        cap = int(getattr(pltpu.get_tpu_info(), "vmem_capacity_bytes"))
        if cap > 0:
            return cap
    except Exception:
        pass
    return 64 << 20


def _choose_tile_rows(batch, dim, itemsize, vmem_cap):
    """Pick tile rows: big enough to amortize per-step overhead, small enough
    that the per-step VMEM working set (double-buffered native-dtype inputs,
    lane-padded label column, and the in-kernel f32 upcast temporaries) fits
    the generation's budget, and capped so big batches split across cores."""
    d_pad = _round_up(dim, 128)
    per_row = (4 * d_pad * itemsize   # a & b inputs, double-buffered
               + 2 * 128 * 4          # (tb,1) f32 label column, lane-padded, 2 bufs
               + 3 * d_pad * 4)       # f32 upcast / product temporaries in-kernel
    if vmem_cap <= (64 << 20):                 # v7x: 64 MiB per TensorCore
        ws_budget, step_target = 36 << 20, 12 << 20
    else:                                      # v5e / v6e: 128 MiB
        ws_budget, step_target = 64 << 20, 6 << 20
    tb_vmem = ws_budget // per_row
    tb_step = step_target // max(2 * dim * itemsize, 1)
    # Keep >= ~4 tiles for large batches (megacore sharding on v7x) but never
    # shrink below 128 rows just to manufacture extra tiles.
    tb_split = max(_round_up(pl.cdiv(batch, 4), 8), 128)
    tb = max(8, (min(tb_vmem, tb_step, tb_split) // 8) * 8)
    # Either tb is a multiple of 8 (< batch, ragged last block is fine) or it
    # equals the full batch dim - both satisfy the (8,128) block constraint.
    return min(tb, batch)


def _contrastive_loss_kernel(a_ref, b_ref, lbl_ref, out_ref, *,
                             batch_size, block_rows):
    # a_ref, b_ref: (TB, D) native-dtype embeddings; lbl_ref: (TB, 1) f32.
    a = a_ref[...].astype(jnp.float32)
    b = b_ref[...].astype(jnp.float32)
    lbl = lbl_ref[...].astype(jnp.float32)                     # (TB, 1)

    # PyTorch cosine_similarity: dot / max(||a||*||b||, eps)
    #   == dot * rsqrt(max(sum_aa * sum_bb, eps^2))   (rsqrt runs on the EUP).
    dot = jnp.sum(a * b, axis=-1, keepdims=True)               # (TB, 1)
    saa = jnp.sum(a * a, axis=-1, keepdims=True)
    sbb = jnp.sum(b * b, axis=-1, keepdims=True)
    cos = dot * jax.lax.rsqrt(jnp.maximum(saa * sbb, EPS * EPS))

    similarities = -(1.0 - cos)                 # COSINE_DISTANCE + kernel_fn=-x
    pos = jnp.maximum(SAME_MARGIN - similarities, 0.0)
    neg = jnp.maximum(similarities - DIFFERENT_MARGIN, 0.0)
    losses = lbl * pos * pos + (1.0 - lbl) * neg * neg          # (TB, 1)

    # Ragged last tile: rows >= batch_size hold undefined data (inputs are NOT
    # padded in HBM). jnp.where - not a multiplicative mask - so NaN/Inf from
    # garbage rows cannot leak into the sum.
    row = (pl.program_id(0) * block_rows
           + jax.lax.broadcasted_iota(jnp.int32, (block_rows, 1), 0))
    losses = jnp.where(row < batch_size, losses, 0.0)

    # Un-normalised per-tile partial sum, broadcast over a dense (8,128) f32
    # block -> single unmasked vector store; sum + single 1/B happen outside.
    out_ref[...] = jnp.full(out_ref.shape, jnp.sum(losses), dtype=jnp.float32)


def modified_contrastive_loss(rep_anchor, rep_other, labels, *, block_rows=None):
    """rep_anchor, rep_other: (B, D) embeddings (any float dtype, e.g. bf16);
    labels: (B,) of 0/1. Returns the mean contrastive loss (size_average=True)."""
    B, D = rep_anchor.shape
    itemsize = max(jnp.dtype(rep_anchor.dtype).itemsize,
                   jnp.dtype(rep_other.dtype).itemsize)
    vmem_cap = _vmem_capacity_bytes()

    if block_rows is None:
        tb = _choose_tile_rows(B, D, itemsize, vmem_cap)
    else:
        tb = min(max(8, _round_up(block_rows, 8)), B)
    num_tiles = pl.cdiv(B, tb)

    # Labels as an f32 column; tiny next to the embedding traffic.
    lbl = labels.astype(jnp.float32).reshape(B, 1)

    d_pad = _round_up(D, 128)
    # Per-step VMEM working set incl. the in-kernel f32 upcast temporaries.
    tile_bytes = (4 * tb * d_pad * itemsize
                  + 2 * tb * 128 * 4
                  + 3 * tb * d_pad * 4
                  + 2 * 8 * 128 * 4)
    hard_cap = (52 << 20) if vmem_cap <= (64 << 20) else (100 << 20)
    vmem_limit = int(min(max(tile_bytes + (8 << 20), 32 << 20), hard_cap))

    cost = pl.CostEstimate(
        flops=6 * B * D + 12 * B,
        transcendentals=B,
        bytes_accessed=2 * B * D * itemsize + 4 * B + num_tiles * 8 * 128 * 4,
    )

    kernel = functools.partial(_contrastive_loss_kernel,
                               batch_size=B, block_rows=tb)

    partials = pl.pallas_call(
        kernel,
        out_shape=jax.ShapeDtypeStruct((num_tiles, 8, 128), jnp.float32),
        grid=(num_tiles,),
        in_specs=[
            pl.BlockSpec((tb, D), lambda i: (i, 0)),
            pl.BlockSpec((tb, D), lambda i: (i, 0)),
            pl.BlockSpec((tb, 1), lambda i: (i, 0)),
        ],
        out_specs=pl.BlockSpec((1, 8, 128), lambda i: (i, 0, 0)),
        compiler_params=pltpu.CompilerParams(
            dimension_semantics=("parallel",),
            vmem_limit_bytes=vmem_limit,
        ),
        cost_estimate=cost,
    )(rep_anchor, rep_other, lbl)

    # Sum the un-normalised per-tile partials, then divide by B exactly once.
    return jnp.sum(partials[:, 0, 0]) / B


def _reference(rep_anchor, rep_other, labels):
    a = rep_anchor.astype(jnp.float32)
    b = rep_other.astype(jnp.float32)
    dot = jnp.sum(a * b, axis=-1)
    na = jnp.linalg.norm(a, axis=-1)
    nb = jnp.linalg.norm(b, axis=-1)
    cos = dot / jnp.maximum(na * nb, EPS)
    sim = -(1.0 - cos)
    lbl = labels.astype(jnp.float32)
    losses = (lbl * jnp.maximum(SAME_MARGIN - sim, 0.0) ** 2
              + (1.0 - lbl) * jnp.maximum(sim - DIFFERENT_MARGIN, 0.0) ** 2)
    return jnp.mean(losses)


if __name__ == "__main__":
    key = jax.random.PRNGKey(0)

    # Case 1: B not a multiple of 8 -> single full-batch block (auto tiling)
    # and a forced 2-tile run with a ragged, unpadded last block.
    k1, k2, k3 = jax.random.split(key, 3)
    B, D = 12, 32
    rep_anchor = jax.random.normal(k1, (B, D), dtype=jnp.float32).astype(jnp.bfloat16)
    rep_other = jax.random.normal(k2, (B, D), dtype=jnp.float32).astype(jnp.bfloat16)
    labels = jax.random.bernoulli(k3, 0.5, (B,)).astype(jnp.int32)

    ref = _reference(rep_anchor, rep_other, labels)

    loss = jax.block_until_ready(
        modified_contrastive_loss(rep_anchor, rep_other, labels))
    assert jnp.allclose(loss, ref, atol=1e-5, rtol=1e-4), (loss, ref)

    loss_tiled = jax.block_until_ready(
        modified_contrastive_loss(rep_anchor, rep_other, labels, block_rows=8))
    assert jnp.allclose(loss_tiled, ref, atol=1e-5, rtol=1e-4), (loss_tiled, ref)

    # Case 2: larger ragged batch, D not a multiple of 128, multi-tile path.
    k4, k5, k6 = jax.random.split(jax.random.PRNGKey(1), 3)
    B2, D2 = 37, 160
    a2 = jax.random.normal(k4, (B2, D2), dtype=jnp.float32).astype(jnp.bfloat16)
    b2 = jax.random.normal(k5, (B2, D2), dtype=jnp.float32).astype(jnp.bfloat16)
    l2 = jax.random.bernoulli(k6, 0.5, (B2,)).astype(jnp.int32)

    ref2 = _reference(a2, b2, l2)
    loss2 = jax.block_until_ready(modified_contrastive_loss(a2, b2, l2))
    assert jnp.allclose(loss2, ref2, atol=1e-5, rtol=1e-4), (loss2, ref2)

    loss2_tiled = jax.block_until_ready(
        modified_contrastive_loss(a2, b2, l2, block_rows=16))
    assert jnp.allclose(loss2_tiled, ref2, atol=1e-5, rtol=1e-4), (loss2_tiled, ref2)

    print("KERNEL_OK")
</pallas_src>

<mosaic_0001>
module attributes {stable_mosaic.version = 11 : i64} {
  func.func @_contrastive_loss_kernel(%arg0: i32, %arg1: memref<12x32xbf16, #tpu.memory_space<vmem>>, %arg2: memref<12x32xbf16, #tpu.memory_space<vmem>>, %arg3: memref<12x1xf32, #tpu.memory_space<vmem>>, %arg4: memref<1x8x128xf32, #tpu.memory_space<vmem>>) attributes {dimension_semantics = [#tpu.dimension_semantics<parallel>], iteration_bounds = array<i64: 1>, scalar_prefetch = 0 : i64, scratch_operands = 0 : i64, tpu.core_type = #tpu.core_type<tc>, window_params = [{transform_indices = @transform_0, window_bounds = array<i64: 12, 32>}, {transform_indices = @transform_1, window_bounds = array<i64: 12, 32>}, {transform_indices = @transform_2, window_bounds = array<i64: 12, 1>}, {transform_indices = @transform_3, window_bounds = array<i64: 1, 8, 128>}]} {
    %c0 = arith.constant 0 : index
    %c0_0 = arith.constant 0 : index
    %0 = vector.load %arg1[%c0, %c0_0] : memref<12x32xbf16, #tpu.memory_space<vmem>>, vector<12x32xbf16>
    %1 = arith.extf %0 : vector<12x32xbf16> to vector<12x32xf32>
    %c0_1 = arith.constant 0 : index
    %c0_2 = arith.constant 0 : index
    %2 = vector.load %arg2[%c0_1, %c0_2] : memref<12x32xbf16, #tpu.memory_space<vmem>>, vector<12x32xbf16>
    %3 = arith.extf %2 : vector<12x32xbf16> to vector<12x32xf32>
    %c0_3 = arith.constant 0 : index
    %c0_4 = arith.constant 0 : index
    %4 = vector.load %arg3[%c0_3, %c0_4] : memref<12x1xf32, #tpu.memory_space<vmem>>, vector<12x1xf32>
    %5 = arith.mulf %1, %3 : vector<12x32xf32>
    %cst = arith.constant dense<0.000000e+00> : vector<12xf32>
    %6 = vector.multi_reduction <add>, %5, %cst [1] : vector<12x32xf32> to vector<12xf32>
    %7 = vector.shape_cast %6 : vector<12xf32> to vector<12x1xf32>
    %8 = arith.mulf %1, %1 : vector<12x32xf32>
    %cst_5 = arith.constant dense<0.000000e+00> : vector<12xf32>
    %9 = vector.multi_reduction <add>, %8, %cst_5 [1] : vector<12x32xf32> to vector<12xf32>
    %10 = vector.shape_cast %9 : vector<12xf32> to vector<12x1xf32>
    %11 = arith.mulf %3, %3 : vector<12x32xf32>
    %cst_6 = arith.constant dense<0.000000e+00> : vector<12xf32>
    %12 = vector.multi_reduction <add>, %11, %cst_6 [1] : vector<12x32xf32> to vector<12xf32>
    %13 = vector.shape_cast %12 : vector<12xf32> to vector<12x1xf32>
    %14 = arith.mulf %10, %13 : vector<12x1xf32>
    %cst_7 = arith.constant 1.000000e-16 : f32
    %15 = vector.broadcast %cst_7 : f32 to vector<12x1xf32>
    %16 = arith.maximumf %14, %15 : vector<12x1xf32>
    %17 = math.rsqrt %16 : vector<12x1xf32>
    %18 = arith.mulf %7, %17 : vector<12x1xf32>
    %cst_8 = arith.constant 1.000000e+00 : f32
    %19 = vector.broadcast %cst_8 : f32 to vector<12x1xf32>
    %20 = arith.subf %19, %18 : vector<12x1xf32>
    %cst_9 = arith.constant 0.000000e+00 : f32
    %21 = vector.broadcast %cst_9 : f32 to vector<12x1xf32>
    %22 = arith.subf %21, %20 : vector<12x1xf32>
    %cst_10 = arith.constant 5.000000e-01 : f32
    %23 = vector.broadcast %cst_10 : f32 to vector<12x1xf32>
    %24 = arith.subf %23, %22 : vector<12x1xf32>
    %cst_11 = arith.constant 0.000000e+00 : f32
    %25 = vector.broadcast %cst_11 : f32 to vector<12x1xf32>
    %26 = arith.maximumf %24, %25 : vector<12x1xf32>
    %cst_12 = arith.constant 1.500000e+00 : f32
    %27 = vector.broadcast %cst_12 : f32 to vector<12x1xf32>
    %28 = arith.subf %22, %27 : vector<12x1xf32>
    %cst_13 = arith.constant 0.000000e+00 : f32
    %29 = vector.broadcast %cst_13 : f32 to vector<12x1xf32>
    %30 = arith.maximumf %28, %29 : vector<12x1xf32>
    %31 = arith.mulf %4, %26 : vector<12x1xf32>
    %32 = arith.mulf %31, %26 : vector<12x1xf32>
    %cst_14 = arith.constant 1.000000e+00 : f32
    %33 = vector.broadcast %cst_14 : f32 to vector<12x1xf32>
    %34 = arith.subf %33, %4 : vector<12x1xf32>
    %35 = arith.mulf %34, %30 : vector<12x1xf32>
    %36 = arith.mulf %35, %30 : vector<12x1xf32>
    %37 = arith.addf %32, %36 : vector<12x1xf32>
    %c12_i32 = arith.constant 12 : i32
    %38 = arith.muli %arg0, %c12_i32 : i32
    %39 = tpu.iota {dimensions = array<i32: 0>} : vector<12x1xi32>
    %40 = vector.broadcast %38 : i32 to vector<12x1xi32>
    %41 = arith.addi %40, %39 : vector<12x1xi32>
    %c12_i32_15 = arith.constant 12 : i32
    %42 = vector.broadcast %c12_i32_15 : i32 to vector<12x1xi32>
    %43 = arith.cmpi slt, %41, %42 : vector<12x1xi32>
    %cst_16 = arith.constant 0.000000e+00 : f32
    %44 = vector.broadcast %cst_16 : f32 to vector<12x1xf32>
    %45 = arith.select %43, %37, %44 : vector<12x1xi1>, vector<12x1xf32>
    %46 = vector.shape_cast %45 : vector<12x1xf32> to vector<1x12x1xf32>
    %cst_17 = arith.constant dense<0.000000e+00> : vector<1xf32>
    %47 = vector.multi_reduction <add>, %46, %cst_17 [1, 2] : vector<1x12x1xf32> to vector<1xf32>
    %48 = vector.shape_cast %47 : vector<1xf32> to vector<1x1x1xf32>
    %49 = vector.extract %48[0, 0, 0] : f32 from vector<1x1x1xf32>
    %50 = vector.broadcast %49 : f32 to vector<1x8x128xf32>
    %c0_18 = arith.constant 0 : index
    %c0_19 = arith.constant 0 : index
    %c0_20 = arith.constant 0 : index
    %51 = vector.load %arg4[%c0_18, %c0_19, %c0_20] : memref<1x8x128xf32, #tpu.memory_space<vmem>>, vector<1x8x128xf32>
    tpu.vector_store %arg4[%c0_18, %c0_19, %c0_20], %50 {strides = array<i32>} : memref<1x8x128xf32, #tpu.memory_space<vmem>>, vector<1x8x128xf32>,
    return
  }
  func.func @transform_0(%arg0: i32) -> (i32, i32) {
    %c0_i32 = arith.constant 0 : i32
    %c0_i32_0 = arith.constant 0 : i32
    return %arg0, %c0_i32 : i32, i32
  }
  func.func @transform_1(%arg0: i32) -> (i32, i32) {
    %c0_i32 = arith.constant 0 : i32
    %c0_i32_0 = arith.constant 0 : i32
    return %arg0, %c0_i32 : i32, i32
  }
  func.func @transform_2(%arg0: i32) -> (i32, i32) {
    %c0_i32 = arith.constant 0 : i32
    %c0_i32_0 = arith.constant 0 : i32
    return %arg0, %c0_i32 : i32, i32
  }
  func.func @transform_3(%arg0: i32) -> (i32, i32, i32) {
    %c0_i32 = arith.constant 0 : i32
    %c0_i32_0 = arith.constant 0 : i32
    %c0_i32_1 = arith.constant 0 : i32
    return %arg0, %c0_i32, %c0_i32_0 : i32, i32, i32
  }
}

</mosaic_0001>

<bundles_post_ra>
// kernel: tpu_custom_call.1
= control target key start
LH: loop header
LB: loop body
LE: loop exit
PB: predicated region body
PF: predicated region fallthrough
CT: control target
= control target key end

     0   :  { %s203_s0 = inlined_call_operand.vmem [shape: bf16[12,32], index: 0, kind: input, shape index: {}]   ;;  %s204_s1 = inlined_call_operand.vmem [shape: bf16[12,32], index: 1, kind: input, shape index: {}]   ;;  %s205_s2 = inlined_call_operand.vmem [shape: f32[12,1], index: 2, kind: input, shape index: {}]   ;;  %s206_s3 = inlined_call_operand.hbm [shape: f32[1,8,128], index: 3, kind: output, shape index: {}]  }
   0x1   :  { %v16_v0 = vld [vmem:[%s203_s0 + $0x4] sm:$0x3]  ;;  %v15_v1 = vld [vmem:[%s203_s0] sm:$0xf] }
   0x2   :  { %v18_v2 = vunpack.c.l.bf16 %v16_v0  ;;  %v17_v3 = vunpack.c.l.bf16 %v15_v1  ;;  %v20_v4 = vld [vmem:[%s204_s1 + $0x4] sm:$0x3]  ;;  %v19_v5 = vld [vmem:[%s204_s1] sm:$0xf] }
   0x3   :  { %8 = vsyncpa [#allocation3], 0  ;;  %vm31_vm0 = vcmask 257024   ;;  %vm27_vm1 = vcmask 261120   ;;  %v22_v6 = vunpack.c.l.bf16 %v20_v4  ;;  %v21_v7 = vunpack.c.l.bf16 %v19_v5  ;;  %v24_v36 = vld [vmem:[%s205_s2 + $0x8] sm:$0xf] }
   0x4   :  { %v36_v8 = vmul.f32 %v18_v2, %v18_v2  ;;  %v35_v9 = vmul.f32 %v17_v3, %v17_v3  ;;  %v84_v34 = vlaneseq  ;;  %v23_v39 = vld [vmem:[%s205_s2] sm:$0xff]  ;;  %v76_v42 = vsub.f32 1.0, %v24_v36  ;;  %s155_s2 = smov [#allocation2]  }
   0x5   :  { %v44_v10 = vmul.f32 %v22_v6, %v22_v6  ;;  %v43_v11 = vmul.f32 %v21_v7, %v21_v7  ;;  %v26_v16 = vmul.f32 %v22_v6, %v18_v2  ;;  %v25_v17 = vmul.f32 %v21_v7, %v17_v3  ;;  %s116_s22 = sshll.u32 %s155_s2, 4  ;;  %s117_s22 = int_to_ptr.vmem [resolvable:$true] %s116_s22 }
   0x6   :  { %v40_v12 = vsel %vm31_vm0, %v36_v8, 0.0  ;;  %v37_v13 = vsel %vm27_vm1, %v35_v9, 0.0  ;;  %v85_v41 = vshrl.u32 %v84_v34, 7  ;;  %v75_v45 = vsub.f32 1.0, %v23_v39  ;;  %s133_s24 = scalar_lea.vmem %s117_s22, 128  ;;  %p138_p1 = scmp.lt.s32.totalorder %s117_s22, %s117_s22 }
   0x7   :  { %41 = vadd.xlane.f32.xlu0 %v40_v12  ;;  %38 = vadd.xlane.f32.xlu1 %v37_v13  ;;  %v48_v14 = vsel %vm31_vm0, %v44_v10, 0.0  ;;  %v45_v15 = vsel %vm27_vm1, %v43_v11, 0.0  ;;  %v32_v18 = vsel %vm31_vm0, %v26_v16, 0.0  ;;  %v28_v19 = vsel %vm27_vm1, %v25_v17, 0.0  ;;  %p134_p0 = scmp.ne.s32.totalorder %s117_s22, %s133_s24  ;;  %p139_p2 = scmp.lt.s32.totalorder %s133_s24, %s133_s24 }
   0x8   :  { %v86_v52 = vadd.s32 8, %v85_v41  ;;  %vm94_vm3 = vcmask 7168   ;;  %vm96_vm4 = vcmask 3072  }
   0x9   :  { %p140_p3 = por %p139_p2, %p138_p1 }
   0xa   :  { %vm91_vm2 = vcmp.lt.s32.totalorder %v86_v52, 12 }
   0xb   :  { %49 = vadd.xlane.f32.xlu0 %v48_v14  ;;  %46 = vadd.xlane.f32.xlu1 %v45_v15  ;;  %p141_p4 = pnand %p140_p3, %p134_p0 }
   0xf   :  { %33 = vadd.xlane.f32.xlu0 %v32_v18  ;;  %29 = vadd.xlane.f32.xlu1 %v28_v19 }
  0x90   :  { %v42_v20 = vpop.xlane.xlu0 %41  ;;  %v39_v21 = vpop.xlane.xlu1 %38 }
  0x94   :  { %v50_v22 = vpop.xlane.xlu0 %49  ;;  %v47_v23 = vpop.xlane.xlu1 %46 }
  0x95   :  { %v52_v24 = vmul.f32 %v50_v22, %v42_v20  ;;  %v51_v25 = vmul.f32 %v47_v23, %v39_v21 }
  0x97   :  { %v54_v26 = vmax.f32 %v52_v24, 1e-16  ;;  %v53_v27 = vmax.f32 %v51_v25, 1e-16 }
  0x98   :  { %v34_v28 = vpop.xlane.xlu0 %33  ;;  %v30_v29 = vpop.xlane.xlu1 %29 }
  0x99   :  { %129 = vrsqrt.f32 %v54_v26 }
  0x9a   :  { %131 = vrsqrt.f32 %v53_v27 }
  0xa6   :  { %v130_v30 = vpop.eup %129 }
  0xa7   :  { %v132_v31 = vpop.eup %131  ;;  %v58_v32 = vmul.f32 %v130_v30, %v34_v28 }
  0xa8   :  { %v57_v33 = vmul.f32 %v132_v31, %v30_v29 }
  0xa9   :  { %v60_v35 = vsub.f32 1.0, %v58_v32 }
  0xaa   :  { %v59_v37 = vsub.f32 1.0, %v57_v33 }
  0xab   :  { %v62_v38 = vsub.f32 0.0, %v60_v35 }
  0xac   :  { %v61_v40 = vsub.f32 0.0, %v59_v37 }
  0xad   :  { %v64_v43 = vsub.f32 0.5, %v62_v38  ;;  %v125_v44 = vadd.f32 -1.5, %v62_v38 }
  0xae   :  { %v63_v46 = vsub.f32 0.5, %v61_v40  ;;  %v124_v47 = vadd.f32 -1.5, %v61_v40 }
  0xaf   :  { %v66_v48 = vmax.f32 %v64_v43, 0.0  ;;  %v70_v49 = vmax.f32 %v125_v44, 0.0 }
  0xb0   :  { %v65_v50 = vmax.f32 %v63_v46, 0.0  ;;  %v69_v51 = vmax.f32 %v124_v47, 0.0 }
  0xb1   :  { %v72_v53 = vmul.f32 %v66_v48, %v24_v36  ;;  %v78_v54 = vmul.f32 %v76_v42, %v70_v49 }
  0xb2   :  { %v71_v55 = vmul.f32 %v65_v50, %v23_v39  ;;  %v77_v56 = vmul.f32 %v75_v45, %v69_v51 }
  0xb3   :  { %v74_v57 = vmul.f32 %v72_v53, %v66_v48  ;;  %v80_v58 = vmul.f32 %v78_v54, %v70_v49 }
  0xb4   :  { %v73_v59 = vmul.f32 %v71_v55, %v65_v50  ;;  %v79_v60 = vmul.f32 %v77_v56, %v69_v51 }
  0xb5   :  { %v82_v61 = vadd.f32 %v80_v58, %v74_v57 }
  0xb6   :  { %v81_v62 = vadd.f32 %v79_v60, %v73_v59 }
  0xb7   :  { %v93_v63 = vsel %vm91_vm2, %v82_v61, 0.0 }
  0xb8   :  { %v95_v0 = vsel %vm94_vm3, %v81_v62, 0.0  ;;  %v97_v1 = vsel %vm96_vm4, %v93_v63, 0.0 }
  0xb9   :  { %v98_v2 = vadd.f32 %v97_v1, %v95_v0 }
  0xbb   :  { %99 = vadd.xlane.f32.xlu0 %v98_v2 }
 0x144   :  { %v100_v3 = vpop.xlane.xlu0 %99 }
 0x145   :  { %v101_v4 = vrot.slane %v100_v3, 4 }
 0x147   :  { %v102_v5 = vadd.f32 %v101_v4, %v100_v3 }
 0x149   :  { %v103_v6 = vrot.slane %v102_v5, 2 }
 0x14b   :  { %v104_v7 = vadd.f32 %v103_v6, %v102_v5 }
 0x14d   :  { %v105_v8 = vrot.slane %v104_v7, 1 }
 0x14f   :  { %v106_v9 = vadd.f32 %v105_v8, %v104_v7 }
 0x151   :  { %126 = vpush %v106_v9 }
 0x182   :  { %s127_s23 = spop %126 }
 0x183   :  { %v108_v10 = vstv %s127_s23 }
 0x184   :  { %109 = vst [vmem:[#allocation2] sm:$0xff] %v108_v10 }
 0x185   :  { %144 = shalt.err (!%p141_p4)
}
 0x186   :  { %119 = dma.vmem_to_hbm [thread:$0]  %s117_s22, 128, %s206_s3, [#allocation3]  }
 0x187   :  { %153 = dma.done.wait [#allocation3], 128  }
 0x188   :  { %154 = vsyncadd [#allocation3], 4294967168 }
 0x189   :  { %123 = vsyncpa [#allocation3], 1 }

</bundles_post_ra>
